<compile_context>
chip_gen: v5e
topology: v5e:2x2
jax: 0.10.0
libtpu: 0.0.40
codegen_flags: <defaults>
</compile_context>

<pallas_src>
import functools

import jax
import jax.numpy as jnp
from jax.experimental import pallas as pl
from jax.experimental.pallas import tpu as pltpu

_K = 4  # HealpixAvgUnpool.kernel_size


def _copy_kernel(x_ref, o_ref):
    """Fast-path body: whole-block lane-dense copy. Both blocks are (rb, S)."""
    o_ref[...] = x_ref[...]


def _replicate_kernel(x_ref, o_ref, *, k):
    """Fallback body: x block (rb, S) -> o block (rb, k, S); stores at lane 0."""
    v = x_ref[...]
    for j in range(k):                       # k static -> fully unrolled
        o_ref[:, j, :] = v


def _vmem_capacity_bytes():
    try:
        return int(pltpu.get_tpu_info().vmem_capacity_bytes)
    except Exception:
        return 128 << 20                     # v5e / v6e default


def _round_up(x, m):
    return ((x + m - 1) // m) * m


def _pick_row_block(n, s, itemsize, out_rows_per_in_row):
    """Row-block size: multiple of the dtype sublane tile, VMEM-budgeted,
    capped at 1024 rows, and small enough to leave >= 4 roughly-equal grid
    steps (megacore / dual-TC sharding) when there is enough work."""
    tile = max(8, 32 // itemsize)            # f32/i32: 8, bf16: 16, int8/fp8: 32
    # Double-buffered input + output bytes per input row per pipeline step.
    per_row = 2 * (1 + out_rows_per_in_row) * s * itemsize
    vmem_cap = _vmem_capacity_bytes()
    budget = max(16 << 20, min(40 << 20, vmem_cap // 5))
    cap = max(tile, (budget // per_row) // tile * tile)
    cap = min(cap, 1024)                     # amortization plateaus past ~512-1024
    if n >= 4 * tile:
        rb = min(cap, _round_up(pl.cdiv(n, 4), tile))   # >= 4 near-equal blocks
    else:
        rb = min(cap, _round_up(n, tile))
    rb = max(rb, tile)
    return rb, per_row * rb, vmem_cap


def healpix_avg_unpool(x, indices_spa=None, indices_sph=None):
    """JAX/Pallas equivalent of HealpixAvgUnpool.forward.

    x: [B, Fin, V, X, Y, Z]  ->  [B, Fin, 4*V, X, Y, Z]
    """
    del indices_spa, indices_sph             # unused, interface parity with MaxUnpool
    B, Fin, V, X, Y, Z = x.shape
    S = X * Y * Z
    N = B * Fin * V
    itemsize = x.dtype.itemsize

    x2d = x.reshape(N, S)                    # contiguous reshape -> free

    lane_aligned = (S % 128) == 0
    out_rows = 1 if lane_aligned else _K     # output block rows per input row block
    rb, vmem_usage, vmem_cap = _pick_row_block(N, S, itemsize, out_rows)
    vmem_limit = int(min(vmem_cap // 2, max(16 << 20, vmem_usage + (8 << 20))))
    n_row_blocks = pl.cdiv(N, rb)

    if lane_aligned:
        # Replication expressed entirely in the output BlockSpec.
        out2d = pl.pallas_call(
            _copy_kernel,
            out_shape=jax.ShapeDtypeStruct((N, _K * S), x.dtype),
            grid=(n_row_blocks, _K),
            in_specs=[pl.BlockSpec((rb, S), lambda i, j: (i, 0))],
            out_specs=pl.BlockSpec((rb, S), lambda i, j: (i, j)),
            compiler_params=pltpu.CompilerParams(
                dimension_semantics=("parallel", "arbitrary"),
                vmem_limit_bytes=vmem_limit,
            ),
        )(x2d)
        return out2d.reshape(B, Fin, _K * V, X, Y, Z)

    # Lane-misaligned S: keep every store at lane offset 0 via a [N, 4, S] view.
    out3d = pl.pallas_call(
        functools.partial(_replicate_kernel, k=_K),
        out_shape=jax.ShapeDtypeStruct((N, _K, S), x.dtype),
        grid=(n_row_blocks,),
        in_specs=[pl.BlockSpec((rb, S), lambda i: (i, 0))],
        out_specs=pl.BlockSpec((rb, _K, S), lambda i: (i, 0, 0)),
        compiler_params=pltpu.CompilerParams(
            dimension_semantics=("parallel",),
            vmem_limit_bytes=vmem_limit,
        ),
    )(x2d)
    return out3d.reshape(B, Fin, _K * V, X, Y, Z)


if __name__ == "__main__":
    key = jax.random.PRNGKey(0)
    k1, k2 = jax.random.split(key)

    # Case A: S = 4*4*4 = 64 (lane-misaligned -> fallback path), float32.
    x_a = jax.random.normal(k1, (2, 3, 16, 4, 4, 4), dtype=jnp.float32)
    out_a = jax.block_until_ready(healpix_avg_unpool(x_a, None, None))
    assert out_a.shape == (2, 3, 4 * 16, 4, 4, 4)
    assert jnp.array_equal(out_a, jnp.repeat(x_a, _K, axis=2))

    # Case B: S = 8*8*8 = 512 (multiple of 128 -> fast path), bfloat16.
    x_b = jax.random.normal(k2, (2, 2, 8, 8, 8, 8), dtype=jnp.bfloat16)
    out_b = jax.block_until_ready(healpix_avg_unpool(x_b, None, None))
    assert out_b.shape == (2, 2, 4 * 8, 8, 8, 8)
    assert jnp.array_equal(out_b, jnp.repeat(x_b, _K, axis=2))

    print("KERNEL_OK")
</pallas_src>

<mosaic_0001>
module attributes {stable_mosaic.version = 11 : i64} {
  func.func @_replicate_kernel(%arg0: i32, %arg1: memref<24x64xf32, #tpu.memory_space<vmem>>, %arg2: memref<24x4x64xf32, #tpu.memory_space<vmem>>) attributes {dimension_semantics = [#tpu.dimension_semantics<parallel>], iteration_bounds = array<i64: 4>, scalar_prefetch = 0 : i64, scratch_operands = 0 : i64, tpu.core_type = #tpu.core_type<tc>, window_params = [{transform_indices = @transform_0, window_bounds = array<i64: 24, 64>}, {transform_indices = @transform_1, window_bounds = array<i64: 24, 4, 64>}]} {
    %c0 = arith.constant 0 : index
    %c0_0 = arith.constant 0 : index
    %0 = vector.load %arg1[%c0, %c0_0] : memref<24x64xf32, #tpu.memory_space<vmem>>, vector<24x64xf32>
    %c0_1 = arith.constant 0 : index
    %c0_2 = arith.constant 0 : index
    %c0_3 = arith.constant 0 : index
    %1 = vector.load %arg2[%c0_1, %c0_2, %c0_3] : memref<24x4x64xf32, #tpu.memory_space<vmem>>, vector<24x1x64xf32>
    %2 = vector.shape_cast %1 : vector<24x1x64xf32> to vector<24x64xf32>
    %3 = vector.shape_cast %0 : vector<24x64xf32> to vector<24x1x64xf32>
    tpu.vector_store %arg2[%c0_1, %c0_2, %c0_3], %3 {strides = array<i32>} : memref<24x4x64xf32, #tpu.memory_space<vmem>>, vector<24x1x64xf32>,
    %c0_4 = arith.constant 0 : index
    %c1 = arith.constant 1 : index
    %c0_5 = arith.constant 0 : index
    %4 = vector.load %arg2[%c0_4, %c1, %c0_5] : memref<24x4x64xf32, #tpu.memory_space<vmem>>, vector<24x1x64xf32>
    %5 = vector.shape_cast %4 : vector<24x1x64xf32> to vector<24x64xf32>
    %6 = vector.shape_cast %0 : vector<24x64xf32> to vector<24x1x64xf32>
    tpu.vector_store %arg2[%c0_4, %c1, %c0_5], %6 {strides = array<i32>} : memref<24x4x64xf32, #tpu.memory_space<vmem>>, vector<24x1x64xf32>,
    %c0_6 = arith.constant 0 : index
    %c2 = arith.constant 2 : index
    %c0_7 = arith.constant 0 : index
    %7 = vector.load %arg2[%c0_6, %c2, %c0_7] : memref<24x4x64xf32, #tpu.memory_space<vmem>>, vector<24x1x64xf32>
    %8 = vector.shape_cast %7 : vector<24x1x64xf32> to vector<24x64xf32>
    %9 = vector.shape_cast %0 : vector<24x64xf32> to vector<24x1x64xf32>
    tpu.vector_store %arg2[%c0_6, %c2, %c0_7], %9 {strides = array<i32>} : memref<24x4x64xf32, #tpu.memory_space<vmem>>, vector<24x1x64xf32>,
    %c0_8 = arith.constant 0 : index
    %c3 = arith.constant 3 : index
    %c0_9 = arith.constant 0 : index
    %10 = vector.load %arg2[%c0_8, %c3, %c0_9] : memref<24x4x64xf32, #tpu.memory_space<vmem>>, vector<24x1x64xf32>
    %11 = vector.shape_cast %10 : vector<24x1x64xf32> to vector<24x64xf32>
    %12 = vector.shape_cast %0 : vector<24x64xf32> to vector<24x1x64xf32>
    tpu.vector_store %arg2[%c0_8, %c3, %c0_9], %12 {strides = array<i32>} : memref<24x4x64xf32, #tpu.memory_space<vmem>>, vector<24x1x64xf32>,
    return
  }
  func.func @transform_0(%arg0: i32) -> (i32, i32) {
    %c0_i32 = arith.constant 0 : i32
    %c0_i32_0 = arith.constant 0 : i32
    return %arg0, %c0_i32 : i32, i32
  }
  func.func @transform_1(%arg0: i32) -> (i32, i32, i32) {
    %c0_i32 = arith.constant 0 : i32
    %c0_i32_0 = arith.constant 0 : i32
    %c0_i32_1 = arith.constant 0 : i32
    return %arg0, %c0_i32, %c0_i32_0 : i32, i32, i32
  }
}

</mosaic_0001>

<bundles_post_ra>
// kernel: tpu_custom_call.1
= control target key start
LH: loop header
LB: loop body
LE: loop exit
PB: predicated region body
PF: predicated region fallthrough
CT: control target
= control target key end

     0   :  { %s356_s6 = smov 0   ;;  %s572_s0 = inlined_call_operand.vmem [shape: f32[96,64], index: 0, kind: input, shape index: {}]   ;;  %s573_s1 = inlined_call_operand.vmem [shape: f32[96,4,64], index: 1, kind: output, shape index: {}]  }
   0x1 LB: > { %s321_s7 = sadd.s32 4294967295, %s344_s6   ;;  %p325_p0 = scmp.ge.s32.totalorder %s344_s6, 1  ;;  %s344_s6 = sphi %s356_s6, %s11_s6  }
   0x2   : > { %p88_p1 = scmp.lt.s32.totalorder %s344_s6, 5 }
   0x4   : > { %p89_p2 = pnand %p325_p0, %p88_p1 }
   0x5   : > { %s108_s8 = smul.u32 (!%p89_p2), 3, %s321_s7 }
   0x6   : > { %92 = sbr.rel (%p89_p2) target bundleno = 111 (0x6f), region = 24 }
   0x7   : > { %s114_s9 = smul.u32 (!%p89_p2), 24, %s321_s7  ;;  %p109_p3 = scmp.lt.s32.totalorder (!%p89_p2), %s108_s8, 11 }
   0x9   : > { %p115_p4 = scmp.lt.s32.totalorder (!%p89_p2), %s114_s9, 95 }
   0xb   : > { %s575_s8 = smov (!%p109_p3, %s108_s8), 11  ;;  %s577_s9 = smov (!%p115_p4, %s114_s9), 95  ;;  %vm168_vm0 = vcmask 516096  }
   0xc   : > { %s326_s10 = sshll.u32 %s575_s8, 3  ;;  %s327_s14 = sshll.u32 %s577_s9, 2 }
   0xd   : > { %s367_s13 = scalar_lea.vmem %s572_s0, %s326_s10  ;;  %s372_s17 = scalar_lea.vmem %s573_s1, %s327_s14 }
   0xe   : > { %v120_v0 = vld [vmem:[%s367_s13] sm:$0xff]  ;;  %v121_v8 = vld [vmem:[%s367_s13 + $0x8] sm:$0xff]  ;;  %v122_v16 = vld [vmem:[%s367_s13 + $0x10] sm:$0xff] }
   0xf   : > { %169 = vst.msk [vmem:[%s372_s17] sm:$0x1] %vm168_vm0, %v120_v0  ;;  %v126_v1 = vrot.slane %v120_v0, 1  ;;  %v127_v2 = vrot.slane %v120_v0, 2  ;;  %v128_v3 = vrot.slane %v120_v0, 3  ;;  %v129_v4 = vrot.slane %v120_v0, 4 }
  0x10   : > { %193 = vst.msk [vmem:[%s372_s17 + $0x1] sm:$0x1] %vm168_vm0, %v120_v0  ;;  %v130_v5 = vrot.slane %v120_v0, 5  ;;  %v131_v6 = vrot.slane %v120_v0, 6  ;;  %v132_v7 = vrot.slane %v120_v0, 7  ;;  %v133_v9 = vrot.slane %v121_v8, 1 }
  0x11   : > { %217 = vst.msk [vmem:[%s372_s17 + $0x2] sm:$0x1] %vm168_vm0, %v120_v0  ;;  %v134_v10 = vrot.slane %v121_v8, 2  ;;  %v135_v11 = vrot.slane %v121_v8, 3  ;;  %v136_v12 = vrot.slane %v121_v8, 4  ;;  %v137_v13 = vrot.slane %v121_v8, 5 }
  0x12   : > { %241 = vst.msk [vmem:[%s372_s17 + $0x3] sm:$0x1] %vm168_vm0, %v120_v0  ;;  %v138_v14 = vrot.slane %v121_v8, 6  ;;  %v139_v15 = vrot.slane %v121_v8, 7  ;;  %v140_v17 = vrot.slane %v122_v16, 1  ;;  %v141_v18 = vrot.slane %v122_v16, 2 }
  0x13   : > { %170 = vst.msk [vmem:[%s372_s17 + $0x4] sm:$0x1] %vm168_vm0, %v126_v1  ;;  %v142_v19 = vrot.slane %v122_v16, 3  ;;  %v143_v20 = vrot.slane %v122_v16, 4  ;;  %v144_v21 = vrot.slane %v122_v16, 5  ;;  %v145_v22 = vrot.slane %v122_v16, 6 }
  0x14   : > { %194 = vst.msk [vmem:[%s372_s17 + $0x5] sm:$0x1] %vm168_vm0, %v126_v1  ;;  %v146_v23 = vrot.slane %v122_v16, 7 }
  0x15   : > { %218 = vst.msk [vmem:[%s372_s17 + $0x6] sm:$0x1] %vm168_vm0, %v126_v1 }
  0x16   : > { %242 = vst.msk [vmem:[%s372_s17 + $0x7] sm:$0x1] %vm168_vm0, %v126_v1 }
  0x17   : > { %171 = vst.msk [vmem:[%s372_s17 + $0x8] sm:$0x1] %vm168_vm0, %v127_v2 }
  0x18   : > { %195 = vst.msk [vmem:[%s372_s17 + $0x9] sm:$0x1] %vm168_vm0, %v127_v2 }
  0x19   : > { %219 = vst.msk [vmem:[%s372_s17 + $0xa] sm:$0x1] %vm168_vm0, %v127_v2 }
  0x1a   : > { %243 = vst.msk [vmem:[%s372_s17 + $0xb] sm:$0x1] %vm168_vm0, %v127_v2 }
  0x1b   : > { %172 = vst.msk [vmem:[%s372_s17 + $0xc] sm:$0x1] %vm168_vm0, %v128_v3 }
  0x1c   : > { %196 = vst.msk [vmem:[%s372_s17 + $0xd] sm:$0x1] %vm168_vm0, %v128_v3 }
  0x1d   : > { %220 = vst.msk [vmem:[%s372_s17 + $0xe] sm:$0x1] %vm168_vm0, %v128_v3 }
  0x1e   : > { %244 = vst.msk [vmem:[%s372_s17 + $0xf] sm:$0x1] %vm168_vm0, %v128_v3 }
  0x1f   : > { %173 = vst.msk [vmem:[%s372_s17 + $0x10] sm:$0x1] %vm168_vm0, %v129_v4 }
  0x20   : > { %197 = vst.msk [vmem:[%s372_s17 + $0x11] sm:$0x1] %vm168_vm0, %v129_v4 }
  0x21   : > { %221 = vst.msk [vmem:[%s372_s17 + $0x12] sm:$0x1] %vm168_vm0, %v129_v4 }
  0x22   : > { %245 = vst.msk [vmem:[%s372_s17 + $0x13] sm:$0x1] %vm168_vm0, %v129_v4 }
  0x23   : > { %174 = vst.msk [vmem:[%s372_s17 + $0x14] sm:$0x1] %vm168_vm0, %v130_v5 }
  0x24   : > { %198 = vst.msk [vmem:[%s372_s17 + $0x15] sm:$0x1] %vm168_vm0, %v130_v5 }
  0x25   : > { %222 = vst.msk [vmem:[%s372_s17 + $0x16] sm:$0x1] %vm168_vm0, %v130_v5 }
  0x26   : > { %246 = vst.msk [vmem:[%s372_s17 + $0x17] sm:$0x1] %vm168_vm0, %v130_v5 }
  0x27   : > { %175 = vst.msk [vmem:[%s372_s17 + $0x18] sm:$0x1] %vm168_vm0, %v131_v6 }
  0x28   : > { %199 = vst.msk [vmem:[%s372_s17 + $0x19] sm:$0x1] %vm168_vm0, %v131_v6 }
  0x29   : > { %223 = vst.msk [vmem:[%s372_s17 + $0x1a] sm:$0x1] %vm168_vm0, %v131_v6 }
  0x2a   : > { %247 = vst.msk [vmem:[%s372_s17 + $0x1b] sm:$0x1] %vm168_vm0, %v131_v6 }
  0x2b   : > { %176 = vst.msk [vmem:[%s372_s17 + $0x1c] sm:$0x1] %vm168_vm0, %v132_v7 }
  0x2c   : > { %200 = vst.msk [vmem:[%s372_s17 + $0x1d] sm:$0x1] %vm168_vm0, %v132_v7 }
  0x2d   : > { %224 = vst.msk [vmem:[%s372_s17 + $0x1e] sm:$0x1] %vm168_vm0, %v132_v7 }
  0x2e   : > { %248 = vst.msk [vmem:[%s372_s17 + $0x1f] sm:$0x1] %vm168_vm0, %v132_v7 }
  0x2f   : > { %177 = vst.msk [vmem:[%s372_s17 + $0x20] sm:$0x1] %vm168_vm0, %v121_v8 }
  0x30   : > { %201 = vst.msk [vmem:[%s372_s17 + $0x21] sm:$0x1] %vm168_vm0, %v121_v8 }
  0x31   : > { %225 = vst.msk [vmem:[%s372_s17 + $0x22] sm:$0x1] %vm168_vm0, %v121_v8 }
  0x32   : > { %249 = vst.msk [vmem:[%s372_s17 + $0x23] sm:$0x1] %vm168_vm0, %v121_v8 }
  0x33   : > { %178 = vst.msk [vmem:[%s372_s17 + $0x24] sm:$0x1] %vm168_vm0, %v133_v9 }
  0x34   : > { %202 = vst.msk [vmem:[%s372_s17 + $0x25] sm:$0x1] %vm168_vm0, %v133_v9 }
  0x35   : > { %226 = vst.msk [vmem:[%s372_s17 + $0x26] sm:$0x1] %vm168_vm0, %v133_v9 }
  0x36   : > { %250 = vst.msk [vmem:[%s372_s17 + $0x27] sm:$0x1] %vm168_vm0, %v133_v9 }
  0x37   : > { %179 = vst.msk [vmem:[%s372_s17 + $0x28] sm:$0x1] %vm168_vm0, %v134_v10 }
  0x38   : > { %203 = vst.msk [vmem:[%s372_s17 + $0x29] sm:$0x1] %vm168_vm0, %v134_v10 }
  0x39   : > { %227 = vst.msk [vmem:[%s372_s17 + $0x2a] sm:$0x1] %vm168_vm0, %v134_v10 }
  0x3a   : > { %251 = vst.msk [vmem:[%s372_s17 + $0x2b] sm:$0x1] %vm168_vm0, %v134_v10 }
  0x3b   : > { %180 = vst.msk [vmem:[%s372_s17 + $0x2c] sm:$0x1] %vm168_vm0, %v135_v11 }
  0x3c   : > { %204 = vst.msk [vmem:[%s372_s17 + $0x2d] sm:$0x1] %vm168_vm0, %v135_v11 }
  0x3d   : > { %228 = vst.msk [vmem:[%s372_s17 + $0x2e] sm:$0x1] %vm168_vm0, %v135_v11 }
  0x3e   : > { %252 = vst.msk [vmem:[%s372_s17 + $0x2f] sm:$0x1] %vm168_vm0, %v135_v11 }
  0x3f   : > { %181 = vst.msk [vmem:[%s372_s17 + $0x30] sm:$0x1] %vm168_vm0, %v136_v12 }
  0x40   : > { %205 = vst.msk [vmem:[%s372_s17 + $0x31] sm:$0x1] %vm168_vm0, %v136_v12 }
  0x41   : > { %229 = vst.msk [vmem:[%s372_s17 + $0x32] sm:$0x1] %vm168_vm0, %v136_v12 }
  0x42   : > { %253 = vst.msk [vmem:[%s372_s17 + $0x33] sm:$0x1] %vm168_vm0, %v136_v12 }
  0x43   : > { %182 = vst.msk [vmem:[%s372_s17 + $0x34] sm:$0x1] %vm168_vm0, %v137_v13 }
  0x44   : > { %206 = vst.msk [vmem:[%s372_s17 + $0x35] sm:$0x1] %vm168_vm0, %v137_v13 }
  0x45   : > { %230 = vst.msk [vmem:[%s372_s17 + $0x36] sm:$0x1] %vm168_vm0, %v137_v13 }
  0x46   : > { %254 = vst.msk [vmem:[%s372_s17 + $0x37] sm:$0x1] %vm168_vm0, %v137_v13 }
  0x47   : > { %183 = vst.msk [vmem:[%s372_s17 + $0x38] sm:$0x1] %vm168_vm0, %v138_v14 }
  0x48   : > { %207 = vst.msk [vmem:[%s372_s17 + $0x39] sm:$0x1] %vm168_vm0, %v138_v14 }
  0x49   : > { %231 = vst.msk [vmem:[%s372_s17 + $0x3a] sm:$0x1] %vm168_vm0, %v138_v14 }
  0x4a   : > { %255 = vst.msk [vmem:[%s372_s17 + $0x3b] sm:$0x1] %vm168_vm0, %v138_v14 }
  0x4b   : > { %184 = vst.msk [vmem:[%s372_s17 + $0x3c] sm:$0x1] %vm168_vm0, %v139_v15 }
  0x4c   : > { %208 = vst.msk [vmem:[%s372_s17 + $0x3d] sm:$0x1] %vm168_vm0, %v139_v15 }
  0x4d   : > { %232 = vst.msk [vmem:[%s372_s17 + $0x3e] sm:$0x1] %vm168_vm0, %v139_v15 }
  0x4e   : > { %256 = vst.msk [vmem:[%s372_s17 + $0x3f] sm:$0x1] %vm168_vm0, %v139_v15 }
  0x4f   : > { %185 = vst.msk [vmem:[%s372_s17 + $0x40] sm:$0x1] %vm168_vm0, %v122_v16 }
  0x50   : > { %209 = vst.msk [vmem:[%s372_s17 + $0x41] sm:$0x1] %vm168_vm0, %v122_v16 }
  0x51   : > { %233 = vst.msk [vmem:[%s372_s17 + $0x42] sm:$0x1] %vm168_vm0, %v122_v16 }
  0x52   : > { %257 = vst.msk [vmem:[%s372_s17 + $0x43] sm:$0x1] %vm168_vm0, %v122_v16 }
  0x53   : > { %186 = vst.msk [vmem:[%s372_s17 + $0x44] sm:$0x1] %vm168_vm0, %v140_v17 }
  0x54   : > { %210 = vst.msk [vmem:[%s372_s17 + $0x45] sm:$0x1] %vm168_vm0, %v140_v17 }
  0x55   : > { %234 = vst.msk [vmem:[%s372_s17 + $0x46] sm:$0x1] %vm168_vm0, %v140_v17 }
  0x56   : > { %258 = vst.msk [vmem:[%s372_s17 + $0x47] sm:$0x1] %vm168_vm0, %v140_v17 }
  0x57   : > { %187 = vst.msk [vmem:[%s372_s17 + $0x48] sm:$0x1] %vm168_vm0, %v141_v18 }
  0x58   : > { %211 = vst.msk [vmem:[%s372_s17 + $0x49] sm:$0x1] %vm168_vm0, %v141_v18 }
  0x59   : > { %235 = vst.msk [vmem:[%s372_s17 + $0x4a] sm:$0x1] %vm168_vm0, %v141_v18 }
  0x5a   : > { %259 = vst.msk [vmem:[%s372_s17 + $0x4b] sm:$0x1] %vm168_vm0, %v141_v18 }
  0x5b   : > { %188 = vst.msk [vmem:[%s372_s17 + $0x4c] sm:$0x1] %vm168_vm0, %v142_v19 }
  0x5c   : > { %212 = vst.msk [vmem:[%s372_s17 + $0x4d] sm:$0x1] %vm168_vm0, %v142_v19 }
  0x5d   : > { %236 = vst.msk [vmem:[%s372_s17 + $0x4e] sm:$0x1] %vm168_vm0, %v142_v19 }
  0x5e   : > { %260 = vst.msk [vmem:[%s372_s17 + $0x4f] sm:$0x1] %vm168_vm0, %v142_v19 }
  0x5f   : > { %189 = vst.msk [vmem:[%s372_s17 + $0x50] sm:$0x1] %vm168_vm0, %v143_v20 }
  0x60   : > { %213 = vst.msk [vmem:[%s372_s17 + $0x51] sm:$0x1] %vm168_vm0, %v143_v20 }
  0x61   : > { %237 = vst.msk [vmem:[%s372_s17 + $0x52] sm:$0x1] %vm168_vm0, %v143_v20 }
  0x62   : > { %261 = vst.msk [vmem:[%s372_s17 + $0x53] sm:$0x1] %vm168_vm0, %v143_v20 }
  0x63   : > { %190 = vst.msk [vmem:[%s372_s17 + $0x54] sm:$0x1] %vm168_vm0, %v144_v21 }
  0x64   : > { %214 = vst.msk [vmem:[%s372_s17 + $0x55] sm:$0x1] %vm168_vm0, %v144_v21 }
  0x65   : > { %238 = vst.msk [vmem:[%s372_s17 + $0x56] sm:$0x1] %vm168_vm0, %v144_v21 }
  0x66   : > { %262 = vst.msk [vmem:[%s372_s17 + $0x57] sm:$0x1] %vm168_vm0, %v144_v21 }
  0x67   : > { %191 = vst.msk [vmem:[%s372_s17 + $0x58] sm:$0x1] %vm168_vm0, %v145_v22 }
  0x68   : > { %215 = vst.msk [vmem:[%s372_s17 + $0x59] sm:$0x1] %vm168_vm0, %v145_v22 }
  0x69   : > { %239 = vst.msk [vmem:[%s372_s17 + $0x5a] sm:$0x1] %vm168_vm0, %v145_v22 }
  0x6a   : > { %263 = vst.msk [vmem:[%s372_s17 + $0x5b] sm:$0x1] %vm168_vm0, %v145_v22 }
  0x6b   : > { %192 = vst.msk [vmem:[%s372_s17 + $0x5c] sm:$0x1] %vm168_vm0, %v146_v23 }
  0x6c   : > { %216 = vst.msk [vmem:[%s372_s17 + $0x5d] sm:$0x1] %vm168_vm0, %v146_v23 }
  0x6d   : > { %240 = vst.msk [vmem:[%s372_s17 + $0x5e] sm:$0x1] %vm168_vm0, %v146_v23 }
  0x6e   : > { %264 = vst.msk [vmem:[%s372_s17 + $0x5f] sm:$0x1] %vm168_vm0, %v146_v23 }
  0x6f PF: > { %s11_s6 = sadd.s32 1, %s344_s6  }
  0x70   : > { %p8_p5 = scmp.ge.s32.totalorder %s11_s6, 6  }
  0x72   :  { %10 = sbr.rel (!%p8_p5) target bundleno = 1 (0x1), region = 54 }

</bundles_post_ra>
